<compile_context>
chip_gen: v5e
topology: v5e:2x2
jax: 0.10.0
libtpu: 0.0.40
codegen_flags: <defaults>
</compile_context>

<pallas_src>
import jax
import jax.numpy as jnp
from jax.experimental import pallas as pl
from jax.experimental.pallas import tpu as pltpu

S = 32.0   # scale
M = 0.35   # margin
T = 0.2    # hard-example re-weighting

# Fold the *S scale and a constant shift into affine branch constants.
# Max possible scaled logit = S*(T+1) + S*T = 44.8 (inputs clamped to [-1,1]),
# so after SHIFT every exponent is <= 0 -> exp cannot overflow f32; SHIFT
# cancels in (lse - target_logit).
SHIFT = -(S * (T + 1.0) + S * T)   # -44.8
A_HARD = S * (T + 1.0)             # 38.4
B_HARD = S * T + SHIFT             # 6.4 + SHIFT
A_EASY = S                         # 32.0

ACC_LANES = 128                    # lane-dense accumulator width


def mross_kernel(gt_ref, cos_ref, loss_ref, acc_ref):
    c_idx = pl.program_id(1)

    @pl.when(c_idx == 0)
    def _init():
        acc_ref[...] = jnp.zeros_like(acc_ref)

    cos = jnp.clip(cos_ref[...].astype(jnp.float32), -1.0, 1.0)   # (TB, TC)
    gt = gt_ref[...]                                              # (TB, 1) f32, pre-clamped

    # MV-softmax 'mos' re-weighting with *S and SHIFT folded into constants.
    # The target column also satisfies the mask (gt > gt - M), so it takes the
    # hard branch here; the finalize step swaps its term for exp(tgt_logit).
    mask = cos > (gt - M)
    shifted = jnp.where(mask, A_HARD * cos + B_HARD, A_EASY * cos + SHIFT)
    e = jnp.exp(shifted)                                          # all <= 1 (clamp + SHIFT)

    TC = e.shape[1]
    lanes = acc_ref.shape[-1]
    if lanes == 1:
        # Ragged fallback (TC not a multiple of 128): simple reduce per tile.
        acc_ref[...] += jnp.sum(e, axis=1, keepdims=True)
    else:
        # Lane-dense accumulation: fold 128-wide lane blocks with plain vreg
        # adds (tile-aligned static slices, no relayout, no per-tile XLU).
        part = e[:, :lanes]
        for j in range(1, TC // lanes):
            part = part + e[:, j * lanes:(j + 1) * lanes]
        acc_ref[...] += part

    @pl.when(c_idx == pl.num_programs(1) - 1)
    def _finalize():
        total = acc_ref[...]
        if lanes != 1:
            total = jnp.sum(total, axis=1, keepdims=True)         # one XLU reduce / row block
        final_gt = jnp.where(gt > 0.0, gt - M, gt)                # warmup margin
        tgt_logit = S * final_gt + SHIFT                          # (TB, 1)
        exp_tgt = jnp.exp(tgt_logit)
        hard_tgt = jnp.exp(A_HARD * gt + B_HARD)                  # term accumulated for target col
        # Exact in real arithmetic; the max() floor guards log() against a
        # possible ULP-level mismatch between hard_tgt and the accumulated term.
        corrected = jnp.maximum(total - hard_tgt + exp_tgt, exp_tgt)
        # SHIFT cancels: log(sum exp(logits+SHIFT)) - (tgt+SHIFT) == lse - tgt.
        loss_ref[...] = jnp.log(corrected) - tgt_logit


def _vmem_limit_bytes():
    """Scoped-VMEM request sized from the actual chip (fallback: v7x-safe)."""
    try:
        phys = getattr(pltpu.get_tpu_info(), "vmem_capacity_bytes", 64 * 1024 * 1024)
    except Exception:
        phys = 64 * 1024 * 1024
    # ~48 MiB on v7x (64 MiB physical), ~96 MiB on v5e/v6e (128 MiB physical).
    return min((phys * 3) // 4, 100 * 1024 * 1024)


def _choose_tiles(B, C, itemsize, tile_budget_bytes):
    """Pick (tb, tc).  tb: sublane-pack aligned, >=2 B tiles when possible so the
    parallel axis splits across v7x's two TensorCores.  tc: largest 128-multiple
    divisor of C whose cosine tile fits the byte budget (double-buffer safe)."""
    sub = {4: 8, 2: 16, 1: 32}.get(itemsize, 8)
    tb_cands = [c for c in (512, 256, 128, 64, 32, 16, 8) if c % sub == 0]
    tb = None
    for c in tb_cands:                       # prefer >=2 tiles along B (megacore)
        if c < B and B % c == 0:
            tb = c
            break
    if tb is None:
        for c in tb_cands:
            if B % c == 0:
                tb = c
                break
    if tb is None:
        tb = B                               # full-extent fallback (small / ragged B)

    tc = None
    for c in (32768, 16384, 8192, 4096, 2048, 1024, 512, 256, 128):
        if c <= C and C % c == 0 and tb * c * itemsize <= tile_budget_bytes:
            tc = c
            break
    if tc is None:
        tc = C                               # full-extent fallback (ragged C)
        # Keep the double-buffered working set inside the VMEM budget by
        # shrinking tb (must stay a pack-aligned divisor of B).
        while tb * tc * itemsize > tile_budget_bytes and tb > sub:
            new_tb = tb // 2
            if new_tb % sub != 0 or B % new_tb != 0:
                break
            tb = new_tb
    return tb, tc


def mross_entropy_loss(inputs, target):
    """inputs: (B, C) float32/bfloat16 cosine similarities; target: (B,) int labels."""
    B, C = inputs.shape
    itemsize = jnp.dtype(inputs.dtype).itemsize
    vmem_limit = _vmem_limit_bytes()
    # Budget the cosine tile at ~1/6 of the scoped limit: 2x for double
    # buffering plus headroom for f32 upcast temps, scratch, gt and output.
    tb, tc = _choose_tiles(B, C, itemsize, vmem_limit // 6)

    tgt2d = target.astype(jnp.int32).reshape(B, 1)
    # O(B) gather FIRST, cast/clamp the B scalars SECOND — never materialize a
    # full (B, C) f32 copy of the logits in HBM.
    gt = jnp.clip(
        jnp.take_along_axis(inputs, tgt2d, axis=1).astype(jnp.float32), -1.0, 1.0
    )

    acc_lanes = ACC_LANES if tc % ACC_LANES == 0 else 1

    per_row = pl.pallas_call(
        mross_kernel,
        out_shape=jax.ShapeDtypeStruct((B, 1), jnp.float32),
        grid_spec=pltpu.PrefetchScalarGridSpec(
            num_scalar_prefetch=0,
            grid=(B // tb, C // tc),
            in_specs=[
                pl.BlockSpec((tb, 1), lambda b, c: (b, 0)),    # gt, resident across C
                pl.BlockSpec((tb, tc), lambda b, c: (b, c)),   # cosine tile (streamed)
            ],
            out_specs=pl.BlockSpec((tb, 1), lambda b, c: (b, 0)),
            scratch_shapes=[pltpu.VMEM((tb, acc_lanes), jnp.float32)],
        ),
        compiler_params=pltpu.CompilerParams(
            dimension_semantics=("parallel", "arbitrary"),
            vmem_limit_bytes=vmem_limit,
        ),
    )(gt, inputs)

    # divide by B once at the end (matches nn.CrossEntropyLoss mean reduction)
    return jnp.mean(per_row)


def mross_reference(inputs, target):
    """Pure-JAX reference mirroring the PyTorch training-mode forward."""
    cos = jnp.clip(inputs.astype(jnp.float32), -1.0, 1.0)
    B, C = cos.shape
    gt = cos[jnp.arange(B), target].reshape(-1, 1)
    mask = cos > (gt - M)
    cos = jnp.where(mask, (T + 1.0) * cos + T, cos)
    final_gt = jnp.where(gt > 0.0, gt - M, gt)
    onehot = jax.nn.one_hot(target, C, dtype=bool)
    cos = jnp.where(onehot, final_gt, cos)
    logits = cos * S
    logprobs = jax.nn.log_softmax(logits, axis=-1)
    return -jnp.mean(logprobs[jnp.arange(B), target])


if __name__ == "__main__":
    key = jax.random.PRNGKey(0)
    k1, k2, k3, k4 = jax.random.split(key, 4)

    # Case 1: f32, exercises a real 2-D grid (tb=8 -> 3 B tiles, tc=512 -> 3 C
    # tiles) including online accumulation and the finalize target correction.
    B1, C1 = 24, 1536
    x1 = jax.random.uniform(k1, (B1, C1), jnp.float32, minval=-1.0, maxval=1.0)
    t1 = jax.random.randint(k2, (B1,), 0, C1, dtype=jnp.int32)
    loss1 = jax.block_until_ready(mross_entropy_loss(x1, t1))
    ref1 = mross_reference(x1, t1)
    assert jnp.allclose(loss1, ref1, atol=1e-4, rtol=1e-4), (loss1, ref1)

    # Case 2: bf16 inputs (half the HBM traffic), tb=16 (bf16 sublane packing),
    # single C tile exercises init+finalize in one step and the lane-dense acc.
    B2, C2 = 32, 1024
    x2 = jax.random.uniform(k3, (B2, C2), jnp.float32,
                            minval=-1.0, maxval=1.0).astype(jnp.bfloat16)
    t2 = jax.random.randint(k4, (B2,), 0, C2, dtype=jnp.int32)
    loss2 = jax.block_until_ready(mross_entropy_loss(x2, t2))
    ref2 = mross_reference(x2, t2)
    assert jnp.allclose(loss2, ref2, atol=1e-3, rtol=1e-3), (loss2, ref2)

    print("KERNEL_OK")
</pallas_src>

<mosaic_0001>
module attributes {stable_mosaic.version = 11 : i64} {
  func.func @mross_kernel(%arg0: i32, %arg1: i32, %arg2: memref<8x1xf32, #tpu.memory_space<vmem>>, %arg3: memref<8x512xf32, #tpu.memory_space<vmem>>, %arg4: memref<8x1xf32, #tpu.memory_space<vmem>>, %arg5: memref<8x128xf32, #tpu.memory_space<vmem>>) attributes {dimension_semantics = [#tpu.dimension_semantics<parallel>, #tpu.dimension_semantics<arbitrary>], iteration_bounds = array<i64: 3, 3>, scalar_prefetch = 0 : i64, scratch_operands = 1 : i64, tpu.core_type = #tpu.core_type<tc>, window_params = [{transform_indices = @transform_0, window_bounds = array<i64: 8, 1>}, {transform_indices = @transform_1, window_bounds = array<i64: 8, 512>}, {transform_indices = @transform_2, window_bounds = array<i64: 8, 1>}]} {
    %c0_i32 = arith.constant 0 : i32
    %0 = arith.cmpi eq, %arg1, %c0_i32 : i32
    %1 = arith.extui %0 : i1 to i32
    %c0_i32_0 = arith.constant 0 : i32
    %2 = arith.cmpi ne, %1, %c0_i32_0 : i32
    scf.if %2 {
      %cst_15 = arith.constant 0.000000e+00 : f32
      %36 = vector.broadcast %cst_15 : f32 to vector<8x128xf32>
      %c0_16 = arith.constant 0 : index
      %c0_17 = arith.constant 0 : index
      %37 = vector.load %arg5[%c0_16, %c0_17] : memref<8x128xf32, #tpu.memory_space<vmem>>, vector<8x128xf32>
      tpu.vector_store %arg5[%c0_16, %c0_17], %36 {strides = array<i32>} : memref<8x128xf32, #tpu.memory_space<vmem>>, vector<8x128xf32>,
    } else {
    }
    %c0 = arith.constant 0 : index
    %c0_1 = arith.constant 0 : index
    %3 = vector.load %arg3[%c0, %c0_1] : memref<8x512xf32, #tpu.memory_space<vmem>>, vector<8x512xf32>
    %cst = arith.constant -1.000000e+00 : f32
    %cst_2 = arith.constant 1.000000e+00 : f32
    %4 = vector.broadcast %cst : f32 to vector<8x512xf32>
    %5 = arith.maximumf %4, %3 : vector<8x512xf32>
    %6 = vector.broadcast %cst_2 : f32 to vector<8x512xf32>
    %7 = arith.minimumf %6, %5 : vector<8x512xf32>
    %c0_3 = arith.constant 0 : index
    %c0_4 = arith.constant 0 : index
    %8 = vector.load %arg2[%c0_3, %c0_4] : memref<8x1xf32, #tpu.memory_space<vmem>>, vector<8x1xf32>
    %cst_5 = arith.constant 3.500000e-01 : f32
    %9 = vector.broadcast %cst_5 : f32 to vector<8x1xf32>
    %10 = arith.subf %8, %9 : vector<8x1xf32>
    %11 = vector.broadcast %10 : vector<8x1xf32> to vector<8x512xf32>
    %12 = arith.cmpf ogt, %7, %11 : vector<8x512xf32>
    %cst_6 = arith.constant 3.840000e+01 : f32
    %13 = vector.broadcast %cst_6 : f32 to vector<8x512xf32>
    %14 = arith.mulf %13, %7 : vector<8x512xf32>
    %cst_7 = arith.constant -3.840000e+01 : f32
    %15 = vector.broadcast %cst_7 : f32 to vector<8x512xf32>
    %16 = arith.addf %14, %15 : vector<8x512xf32>
    %cst_8 = arith.constant 3.200000e+01 : f32
    %17 = vector.broadcast %cst_8 : f32 to vector<8x512xf32>
    %18 = arith.mulf %17, %7 : vector<8x512xf32>
    %cst_9 = arith.constant -4.480000e+01 : f32
    %19 = vector.broadcast %cst_9 : f32 to vector<8x512xf32>
    %20 = arith.addf %18, %19 : vector<8x512xf32>
    %21 = arith.select %12, %16, %20 : vector<8x512xi1>, vector<8x512xf32>
    %22 = math.exp %21 : vector<8x512xf32>
    %23 = vector.extract_strided_slice %22 {offsets = [0, 0], sizes = [8, 128], strides = [1, 1]} : vector<8x512xf32> to vector<8x128xf32>
    %24 = vector.extract_strided_slice %22 {offsets = [0, 128], sizes = [8, 128], strides = [1, 1]} : vector<8x512xf32> to vector<8x128xf32>
    %25 = arith.addf %23, %24 : vector<8x128xf32>
    %26 = vector.extract_strided_slice %22 {offsets = [0, 256], sizes = [8, 128], strides = [1, 1]} : vector<8x512xf32> to vector<8x128xf32>
    %27 = arith.addf %25, %26 : vector<8x128xf32>
    %28 = vector.extract_strided_slice %22 {offsets = [0, 384], sizes = [8, 128], strides = [1, 1]} : vector<8x512xf32> to vector<8x128xf32>
    %29 = arith.addf %27, %28 : vector<8x128xf32>
    %c0_10 = arith.constant 0 : index
    %c0_11 = arith.constant 0 : index
    %30 = vector.load %arg5[%c0_10, %c0_11] : memref<8x128xf32, #tpu.memory_space<vmem>>, vector<8x128xf32>
    %31 = arith.addf %30, %29 : vector<8x128xf32>
    %c0_12 = arith.constant 0 : index
    %c0_13 = arith.constant 0 : index
    %32 = vector.load %arg5[%c0_12, %c0_13] : memref<8x128xf32, #tpu.memory_space<vmem>>, vector<8x128xf32>
    tpu.vector_store %arg5[%c0_12, %c0_13], %31 {strides = array<i32>} : memref<8x128xf32, #tpu.memory_space<vmem>>, vector<8x128xf32>,
    %c2_i32 = arith.constant 2 : i32
    %33 = arith.cmpi eq, %arg1, %c2_i32 : i32
    %34 = arith.extui %33 : i1 to i32
    %c0_i32_14 = arith.constant 0 : i32
    %35 = arith.cmpi ne, %34, %c0_i32_14 : i32
    scf.if %35 {
      %c0_15 = arith.constant 0 : index
      %c0_16 = arith.constant 0 : index
      %36 = vector.load %arg5[%c0_15, %c0_16] : memref<8x128xf32, #tpu.memory_space<vmem>>, vector<8x128xf32>
      %cst_17 = arith.constant dense<0.000000e+00> : vector<8xf32>
      %37 = vector.multi_reduction <add>, %36, %cst_17 [1] : vector<8x128xf32> to vector<8xf32>
      %38 = vector.shape_cast %37 : vector<8xf32> to vector<8x1xf32>
      %cst_18 = arith.constant 0.000000e+00 : f32
      %39 = vector.broadcast %cst_18 : f32 to vector<8x1xf32>
      %40 = arith.cmpf ogt, %8, %39 : vector<8x1xf32>
      %cst_19 = arith.constant 3.500000e-01 : f32
      %41 = vector.broadcast %cst_19 : f32 to vector<8x1xf32>
      %42 = arith.subf %8, %41 : vector<8x1xf32>
      %43 = arith.select %40, %42, %8 : vector<8x1xi1>, vector<8x1xf32>
      %cst_20 = arith.constant 3.200000e+01 : f32
      %44 = vector.broadcast %cst_20 : f32 to vector<8x1xf32>
      %45 = arith.mulf %44, %43 : vector<8x1xf32>
      %cst_21 = arith.constant -4.480000e+01 : f32
      %46 = vector.broadcast %cst_21 : f32 to vector<8x1xf32>
      %47 = arith.addf %45, %46 : vector<8x1xf32>
      %48 = math.exp %47 : vector<8x1xf32>
      %cst_22 = arith.constant 3.840000e+01 : f32
      %49 = vector.broadcast %cst_22 : f32 to vector<8x1xf32>
      %50 = arith.mulf %49, %8 : vector<8x1xf32>
      %cst_23 = arith.constant -3.840000e+01 : f32
      %51 = vector.broadcast %cst_23 : f32 to vector<8x1xf32>
      %52 = arith.addf %50, %51 : vector<8x1xf32>
      %53 = math.exp %52 : vector<8x1xf32>
      %54 = arith.subf %38, %53 : vector<8x1xf32>
      %55 = arith.addf %54, %48 : vector<8x1xf32>
      %56 = arith.maximumf %55, %48 : vector<8x1xf32>
      %57 = math.log %56 : vector<8x1xf32>
      %58 = arith.subf %57, %47 : vector<8x1xf32>
      %c0_24 = arith.constant 0 : index
      %c0_25 = arith.constant 0 : index
      %59 = vector.load %arg4[%c0_24, %c0_25] : memref<8x1xf32, #tpu.memory_space<vmem>>, vector<8x1xf32>
      tpu.vector_store %arg4[%c0_24, %c0_25], %58 {strides = array<i32>} : memref<8x1xf32, #tpu.memory_space<vmem>>, vector<8x1xf32>,
    } else {
    }
    return
  }
  func.func @transform_0(%arg0: i32, %arg1: i32) -> (i32, i32) {
    %c0_i32 = arith.constant 0 : i32
    %c0_i32_0 = arith.constant 0 : i32
    return %arg0, %c0_i32 : i32, i32
  }
  func.func @transform_1(%arg0: i32, %arg1: i32) -> (i32, i32) {
    %c0_i32 = arith.constant 0 : i32
    return %arg0, %arg1 : i32, i32
  }
  func.func @transform_2(%arg0: i32, %arg1: i32) -> (i32, i32) {
    %c0_i32 = arith.constant 0 : i32
    %c0_i32_0 = arith.constant 0 : i32
    return %arg0, %c0_i32 : i32, i32
  }
}

</mosaic_0001>

<bundles_post_ra>
// kernel: tpu_custom_call.1
= control target key start
LH: loop header
LB: loop body
LE: loop exit
PB: predicated region body
PF: predicated region fallthrough
CT: control target
= control target key end

     0   :  { %7 = vsyncpa [#allocation4], 0  ;;  %s717_s0 = inlined_call_operand.vmem [shape: f32[24,1], index: 0, kind: input, shape index: {}]   ;;  %s718_s1 = inlined_call_operand.hbm [shape: f32[24,1536], index: 1, kind: input, shape index: {}]   ;;  %s719_s2 = inlined_call_operand.vmem [shape: f32[24,1], index: 2, kind: output, shape index: {}]  }
   0x1   :  { %9 = vsyncpa [#allocation4 + $0x1], 0  ;;  %s598_s9 = smov 0   ;;  %s600_s10 = smov 0  }
   0x2   :  { %s602_s11 = smov 0   ;;  %s604_s12 = smov 0  }
   0x3   :  { %s606_s13 = smov 0   ;;  %s608_s14 = smov 0  }
   0x4   :  { %s610_s15 = smov 0   ;;  %s612_s16 = smov 0  }
   0x5 LB: > { %s374_s17 = sadd.s32 4294967295, %s579_s16   ;;  %s24_s18 = sadd.s32 1, %s571_s14  ;;  %s579_s16 = sphi %s612_s16, %s15_s16   ;;  %s575_s15 = sphi %s610_s15, %s728_s15   ;;  %s571_s14 = sphi %s608_s14, %s727_s14   ;;  %s567_s13 = sphi %s606_s13, %s726_s13   ;;  %s563_s12 = sphi %s604_s12, %s725_s12   ;;  %s559_s11 = sphi %s602_s11, %s724_s11   ;;  %s555_s10 = sphi %s600_s10, %s723_s10   ;;  %s551_s9 = sphi %s598_s9, %s722_s9  }
   0x6   : > { %p25_p0 = scmp.ge.s32.totalorder %s24_s18, 3  ;;  %s27_s19 = sadd.s32 1, %s575_s15 }
   0x7   : > { %s62_s20 = sadd.s32 1, %s559_s11  ;;  %p69_p1 = scmp.ne.s32.totalorder %s559_s11, %s555_s10 }
   0x8   : > { %s730_s18 = smov (%p25_p0, %s24_s18), 0  ;;  %s732_s19 = smov (!%p25_p0, %s27_s19), %s575_s15 }
   0x9   : > { %s58_s21 = ssub.s32 %s571_s14, %s730_s18  ;;  %p70_p2 = scmp.eq.s32.totalorder %s579_s16, 0 }
   0xa   : > { %p29_p3 = scmp.ge.s32.totalorder %s732_s19, 3  ;;  %p75_p4 = scmp.ne.s32.totalorder %s555_s10, %s551_s9 }
   0xb   : > { %p649_p5 = por %p70_p2, %p69_p1  ;;  %p76_p6 = scmp.eq.s32.totalorder %s374_s17, 0 }
   0xc   : > { %s734_s19 = smov (%p29_p3, %s732_s19), 0  ;;  %p401_p8 = scmp.lt.s32.totalorder %s579_s16, 9 }
   0xd   : > { %p655_p7 = por %p76_p6, %p75_p4  ;;  %s57_s24 = ssub.s32 %s575_s15, %s734_s19 }
   0xe   : > { %s59_s25 = sor.u32 %s58_s21, %s57_s24  ;;  %s132_s26 = sand.u32 1, %s559_s11  }
   0xf   : > { %p60_p9 = scmp.eq.s32.totalorder %s59_s25, 0  ;;  %s378_s27 = sshll.u32 %s132_s26, 5 }
  0x10   : > { %s379_s28 = sshll.u32 %s571_s14, 2  ;;  %s394_s30 = smul.u32 12, %s575_s15 }
  0x11   : > { %s665_s29 = scalar_select %p60_p9, %s559_s11, %s62_s20  }
  0x12   : > { %s136_s3 = scalar_lea.vmem [#allocation3], %s378_s27  ;;  %p398_p10 = pnand %p401_p8, %p649_p5 }
  0x13   : > { %s147_s4 = sshll.u32 %s136_s3, 4  ;;  %s141_s5 = sadd.s32 %s394_s30, %s379_s28  ;;  %s148_s4 = int_to_ptr.vmem [resolvable:$true] %s147_s4 }
  0x14   : > { %s380_s6 = sshll.u32 %s141_s5, 3  ;;  %p381_p11 = scmp.ge.s32.totalorder %s579_s16, 1 }
  0x15   : > { %s143_s9 = scalar_lea.hbm %s718_s1, %s380_s6  ;;  %p152_p12 = scmp.lt.s32.totalorder %s579_s16, 10 }
  0x16   : > { %s145_s17 = sshll.u32 %s143_s9, 4  ;;  %s133_s21 = scalar_lea.sflag [#allocation4], %s132_s26  ;;  %s146_s17 = int_to_ptr.hbm [resolvable:$true] %s145_s17 }
  0x17   : > { %400 = dma.hbm_to_vmem [thread:$0]  (!%p398_p10), %s146_s17, 512, %s148_s4, %s133_s21  }
  0x18   : > { %p153_p13 = pnand %p381_p11, %p152_p12 }
  0x19   : > { %s158_s20 = sand.u32 (!%p153_p13), 1, %s555_s10  }
  0x1a   : > { %156 = sbr.rel (%p153_p13) target bundleno = 321 (0x141), region = 28  ;;  %s382_s22 = sshll.u32 (!%p153_p13), %s158_s20, 5 }
  0x1b   : > { %s159_s24 = scalar_lea.sflag (!%p153_p13), [#allocation4], %s158_s20  ;;  %s162_s25 = scalar_lea.vmem (!%p153_p13), [#allocation3], %s382_s22 }
  0x1f   : > { %546 = dma.done.wait (%p655_p7), %s159_s24, 512  }
  0x20   : > { %548 = vsyncadd (%p655_p7), %s159_s24, 4294966784  ;;  %p187_p0 = scmp.lt.s32.totalorder %s567_s13, 2  ;;  %p385_p1 = scmp.ne.s32.totalorder %s563_s12, 0 }
  0x22   : > { %s736_s13 = smov (!%p187_p0, %s567_s13), 2  ;;  %199 = sbr.rel (%p385_p1) target bundleno = 41 (0x29), region = 36 }
  0x23   : > { %s383_s27 = sshll.u32 %s736_s13, 3 }
  0x24   : > { %s190_s30 = scalar_lea.vmem %s717_s0, %s383_s27  ;;  %s688_s5 = scalar_lea.vmem %s719_s2, %s383_s27 }
  0x27   : > { %v581_v0 = vmov 0.0  }
  0x28   : > { %200 = vst [vmem:[#allocation2] sm:$0xff] %v581_v0 }
  0x29 PF: > { %v213_v1 = vld [vmem:[%s190_s30] sm:$0xff]  ;;  %v582_v2 = vmov 0   ;;  %v201_v4 = vld [vmem:[%s162_s25] sm:$0xff]  ;;  %v202_v5 = vld [vmem:[%s162_s25 + $0x8] sm:$0xff]  ;;  %p391_p2 = scmp.ne.s32.totalorder %s563_s12, 2 }
  0x2a   : > { %468 = vset.pattern.permute.xlu0 %v582_v2  ;;  %v390_v3 = vadd.f32 -0.35, %v213_v1  ;;  %v203_v6 = vld [vmem:[%s162_s25 + $0x10] sm:$0xff]  ;;  %v204_v7 = vld [vmem:[%s162_s25 + $0x18] sm:$0xff]  ;;  %v386_v8 = vclamps-f32 %v201_v4, 1.0  ;;  %v387_v9 = vclamps-f32 %v202_v5, 1.0 }
  0x2b   : > { %v388_v10 = vclamps-f32 %v203_v6, 1.0  ;;  %v389_v11 = vclamps-f32 %v204_v7, 1.0 }
  0x2c   : > { %217 = vperm.xlu0 %468, %v390_v3   ;;  %v224_v12 = vmul.f32 38.4, %v386_v8  ;;  %v225_v13 = vmul.f32 38.4, %v387_v9  ;;  %v232_v15 = vmul.f32 32.0, %v386_v8  ;;  %v233_v16 = vmul.f32 32.0, %v387_v9 }
  0x2d   : > { %v226_v14 = vmul.f32 38.4, %v388_v10  ;;  %v234_v17 = vmul.f32 32.0, %v388_v10  ;;  %v227_v18 = vmul.f32 38.4, %v389_v11  ;;  %v235_v19 = vmul.f32 32.0, %v389_v11 }
  0x2e   : > { %v228_v20 = vadd.f32 -38.4, %v224_v12  ;;  %v229_v21 = vadd.f32 -38.4, %v225_v13  ;;  %v236_v23 = vadd.f32 -44.8, %v232_v15 }
  0x2f   : > { %v230_v22 = vadd.f32 -38.4, %v226_v14  ;;  %v237_v24 = vadd.f32 -44.8, %v233_v16  ;;  %v238_v25 = vadd.f32 -44.8, %v234_v17 }
  0x30   : > { %v231_v26 = vadd.f32 -38.4, %v227_v18  ;;  %v239_v27 = vadd.f32 -44.8, %v235_v19  ;;  %v255_v43 = vld [vmem:[#allocation2] sm:$0xff] }
  0x9e   : > { %v218_v28 = vpop.permute.xlu0 %217 }
  0x9f   : > { %vm220_vm0 = vcmp.gt.f32.partialorder %v386_v8, %v218_v28  ;;  %vm221_vm1 = vcmp.gt.f32.partialorder %v387_v9, %v218_v28  ;;  %vm222_vm2 = vcmp.gt.f32.partialorder %v388_v10, %v218_v28  ;;  %vm223_vm3 = vcmp.gt.f32.partialorder %v389_v11, %v218_v28 }
  0xa0   : > { %v240_v29 = vsel %vm220_vm0, %v228_v20, %v236_v23  ;;  %v241_v30 = vsel %vm221_vm1, %v229_v21, %v237_v24  ;;  %v242_v31 = vsel %vm222_vm2, %v230_v22, %v238_v25  ;;  %v243_v32 = vsel %vm223_vm3, %v231_v26, %v239_v27 }
  0xa1   : > { %v244_v33 = vmul.f32 1.442695, %v240_v29  ;;  %v246_v34 = vmul.f32 1.442695, %v241_v30  ;;  %v248_v35 = vmul.f32 1.442695, %v242_v31 }
  0xa2   : > { %v250_v36 = vmul.f32 1.442695, %v243_v32 }
  0xa3   : > { %469 = vpow2.f32 %v244_v33 }
  0xa4   : > { %471 = vpow2.f32 %v246_v34 }
  0xa5   : > { %473 = vpow2.f32 %v248_v35 }
  0xa6   : > { %475 = vpow2.f32 %v250_v36 }
  0xa9   : > { %v470_v37 = vpop.eup %469 }
  0xaa   : > { %v472_v38 = vpop.eup %471 }
  0xab   : > { %v252_v39 = vadd.f32 %v472_v38, %v470_v37  ;;  %v474_v40 = vpop.eup %473 }
  0xac   : > { %v476_v42 = vpop.eup %475 }
  0xad   : > { %v253_v41 = vadd.f32 %v474_v40, %v252_v39 }
  0xaf   : > { %v254_v44 = vadd.f32 %v476_v42, %v253_v41  ;;  %261 = sbr.rel (%p391_p2) target bundleno = 321 (0x141), region = 40 }
  0xb1   : > { %v256_v45 = vadd.f32 %v255_v43, %v254_v44 }
  0xb3   : > { %257 = vst [vmem:[#allocation2] sm:$0xff] %v256_v45 }
  0xb4   : > { %vm265_vm4 = vcmp.gt.f32.partialorder %v213_v1, 0.0  ;;  %v271_v48 = vmul.f32 38.4, %v213_v1  ;;  %vm281_vm5 = vcmask 7168  }
  0xb5   : > { %v266_v47 = vsel %vm265_vm4, %v390_v3, %v213_v1 }
  0xb6   : > { %v267_v49 = vmul.f32 32.0, %v266_v47  ;;  %v272_v50 = vadd.f32 -38.4, %v271_v48 }
  0xb8   : > { %v268_v51 = vadd.f32 -44.8, %v267_v49  ;;  %v273_v52 = vmul.f32 1.442695, %v272_v50 }
  0xba   : > { %v262_v46 = vld [vmem:[#allocation2] sm:$0xff]  ;;  %v269_v53 = vmul.f32 1.442695, %v268_v51  ;;  %477 = vpow2.f32 %v273_v52 }
  0xbb   : > { %263 = vadd.xlane.f32.xlu0 %v262_v46 }
  0xbc   : > { %479 = vpow2.f32 %v269_v53 }
  0xc0   : > { %v478_v54 = vpop.eup %477 }
  0xc2   : > { %v480_v55 = vpop.eup %479 }
 0x12e   : > { %v264_v56 = vpop.xlane.xlu0 %263 }
 0x12f   : > { %v275_v57 = vsub.f32 %v264_v56, %v478_v54 }
 0x131   : > { %v276_v58 = vadd.f32 %v480_v55, %v275_v57 }
 0x133   : > { %v277_v59 = vmax.f32 %v276_v58, %v480_v55 }
 0x135   : > { %481 = vlog2.f32 %v277_v59 }
 0x13b   : > { %v482_v60 = vpop.eup %481 }
 0x13c   : > { %v279_v61 = vmul.f32 0.6931472, %v482_v60 }
 0x13e   : > { %v280_v62 = vsub.f32 %v279_v61, %v268_v51 }
 0x140   : > { %282 = vst.msk [vmem:[%s688_s5] sm:$0xff] %vm281_vm5, %v280_v62 }
 0x141 PF: > { %s15_s16 = sadd.s32 1, %s579_s16   ;;  %s722_s9 = smov %s555_s10 }
 0x142   : > { %p12_p3 = scmp.ge.s32.totalorder %s15_s16, 11   ;;  %s723_s10 = smov %s559_s11 }
 0x143   : > { %s724_s11 = smov %s665_s29  ;;  %s725_s12 = smov %s571_s14 }
 0x144   : > { %s726_s13 = smov %s575_s15  ;;  %s727_s14 = smov %s730_s18 }
 0x145   : > { %s728_s15 = smov %s734_s19  ;;  %14 = sbr.rel (!%p12_p3) target bundleno = 5 (0x5), region = 79 }
 0x14a   :  { %302 = vsyncpa [#allocation4], 1 }
 0x14b   :  { %304 = vsyncpa [#allocation4 + $0x1], 1 }

</bundles_post_ra>
